<compile_context>
chip_gen: v6e
topology: v6e:2x2x1
jax: 0.10.0
libtpu: 0.0.40
codegen_flags: <defaults>
</compile_context>

<pallas_src>
import functools

import jax
import jax.numpy as jnp
from jax.experimental import pallas as pl
from jax.experimental.pallas import tpu as pltpu

LANE = 128          # TPU lane width; hidden dims are zero-padded to this.
NUM_LAYERS = 4
BIAS_ROWS = 8       # bias slab rows (only 0..3 used): keeps a clean (8,128) tile
HIDDEN = (32, 64, 32)
DEFAULT_TILE_B = 2048


def _round_up(v, m):
    return ((v + m - 1) // m) * m


def qnet_kernel(x_ref, w_ref, b_ref, out_ref):
    """Fused 4-layer MLP on one batch tile.

    x_ref  : (TILE_B, state_dim)   f32
    w_ref  : (4, 128, 128)         f32 or bf16, zero-padded weights (in, out)
    b_ref  : (8, 128)              f32, rows 0..3 = biases (zero-padded)
    out_ref: (TILE_B, action_dim)  f32, narrow / lane-masked store
    """
    sd = x_ref.shape[1]        # static state_dim
    ad = out_ref.shape[1]      # static action_dim
    wdt = w_ref.dtype          # MXU input dtype (f32 or bf16)

    x = x_ref[...]
    b = b_ref[...]             # (8, 128) f32

    # fc1: (TILE_B, sd) @ (sd, 128) — only the first `sd` rows of the W1 slab.
    h = jnp.dot(x.astype(wdt), w_ref[0, :sd, :],
                preferred_element_type=jnp.float32) + b[0:1, :]
    h = jnp.maximum(h, 0.0)

    # fc2
    h = jnp.dot(h.astype(wdt), w_ref[1],
                preferred_element_type=jnp.float32) + b[1:2, :]
    h = jnp.maximum(h, 0.0)

    # fc3
    h = jnp.dot(h.astype(wdt), w_ref[2],
                preferred_element_type=jnp.float32) + b[2:3, :]
    h = jnp.maximum(h, 0.0)

    # fc4 (no activation); store only the real action_dim lanes.
    h = jnp.dot(h.astype(wdt), w_ref[3],
                preferred_element_type=jnp.float32) + b[3:4, :]
    out_ref[...] = h[:, :ad].astype(out_ref.dtype)


def pack_qnet_params(params, weight_dtype=jnp.bfloat16):
    """Pack w1..w4 / b1..b4 into two zero-padded slabs (2 DMAs instead of 8).

    Call this ONCE per parameter version (e.g. via make_qnet_forward), not on
    every forward pass.
    """
    w_slab = jnp.zeros((NUM_LAYERS, LANE, LANE), dtype=weight_dtype)
    b_slab = jnp.zeros((BIAS_ROWS, LANE), dtype=jnp.float32)
    for k in range(NUM_LAYERS):
        w = params[f"w{k + 1}"]
        bvec = params[f"b{k + 1}"].reshape(-1)
        w_slab = w_slab.at[k, :w.shape[0], :w.shape[1]].set(w.astype(weight_dtype))
        b_slab = b_slab.at[k, :bvec.shape[0]].set(bvec.astype(jnp.float32))
    return w_slab, b_slab


def _pick_tile(batch, tile_b):
    """Batch tile: multiple of 8 sublanes, capped by tile_b, and capped at
    ~ceil(batch/2) so large batches produce >= 2 grid steps (both TCs on v7x)."""
    full = _round_up(max(batch, 1), 8)
    half = _round_up(max((batch + 1) // 2, 1), 8)
    return max(8, min(tile_b, full, half if batch > 8 else full))


def _forward_impl(x, w_slab, b_slab, action_dim, tile_b):
    batch, state_dim = x.shape
    tb = _pick_tile(batch, tile_b)
    grid = (pl.cdiv(batch, tb),)

    flops = 2 * batch * (state_dim * 32 + 32 * 64 + 64 * 32 + 32 * action_dim)
    bytes_accessed = (
        batch * (state_dim + action_dim) * 4                      # streamed x + out
        + int(w_slab.size) * jnp.dtype(w_slab.dtype).itemsize      # resident weights
        + int(b_slab.size) * 4                                     # resident biases
    )

    return pl.pallas_call(
        qnet_kernel,
        out_shape=jax.ShapeDtypeStruct((batch, action_dim), jnp.float32),
        grid=grid,
        in_specs=[
            # x: tiled along batch, streamed through the pipeline.
            pl.BlockSpec((tb, state_dim), lambda i: (i, 0)),
            # packed weights: same block every step -> fetched once, VMEM-resident.
            pl.BlockSpec((NUM_LAYERS, LANE, LANE), lambda i: (0, 0, 0)),
            # packed biases: VMEM-resident.
            pl.BlockSpec((BIAS_ROWS, LANE), lambda i: (0, 0)),
        ],
        # Narrow output: only action_dim columns ever touch HBM.
        out_specs=pl.BlockSpec((tb, action_dim), lambda i: (i, 0)),
        compiler_params=pltpu.CompilerParams(
            dimension_semantics=("parallel",),   # megacore sharding on v7x
        ),
        cost_estimate=pl.CostEstimate(
            flops=flops, transcendentals=0, bytes_accessed=bytes_accessed),
    )(x, w_slab, b_slab)


def make_qnet_forward(params, weight_dtype=jnp.bfloat16, tile_b=DEFAULT_TILE_B):
    """Pack the parameters once and return a jitted forward(x) closure.

    weight_dtype=jnp.bfloat16 : MXU-native fast path (f32 accumulation kept).
    weight_dtype=jnp.float32  : matches the pure-JAX reference lowering.
    """
    w_slab, b_slab = pack_qnet_params(params, weight_dtype)
    action_dim = params["w4"].shape[1]

    @jax.jit
    def forward(x):
        return _forward_impl(x, w_slab, b_slab, action_dim, tile_b)

    return forward


def qnet_forward(x, params, weight_dtype=jnp.bfloat16, tile_b=DEFAULT_TILE_B):
    """One-off convenience wrapper (packs params per call).

    For the DQN acting/training loop, use make_qnet_forward so the parameter
    packing is hoisted out of the per-step path.
    """
    w_slab, b_slab = pack_qnet_params(params, weight_dtype)
    return _forward_impl(x, w_slab, b_slab, params["w4"].shape[1], tile_b)


def init_qnet_params(key, state_dim, action_dim):
    """Deterministic synthetic init (PyTorch-style uniform fan-in bound)."""
    dims = [(state_dim, 32), (32, 64), (64, 32), (32, action_dim)]
    params = {}
    keys = jax.random.split(key, 2 * len(dims))
    for i, (fan_in, fan_out) in enumerate(dims):
        bound = 1.0 / jnp.sqrt(jnp.float32(fan_in))
        params[f"w{i + 1}"] = jax.random.uniform(
            keys[2 * i], (fan_in, fan_out), dtype=jnp.float32,
            minval=-bound, maxval=bound)
        params[f"b{i + 1}"] = jax.random.uniform(
            keys[2 * i + 1], (1, fan_out), dtype=jnp.float32,
            minval=-bound, maxval=bound)
    return params


def qnet_reference(x, params):
    """Pure-JAX reference for correctness checking."""
    h = jnp.maximum(x @ params["w1"] + params["b1"], 0.0)
    h = jnp.maximum(h @ params["w2"] + params["b2"], 0.0)
    h = jnp.maximum(h @ params["w3"] + params["b3"], 0.0)
    return h @ params["w4"] + params["b4"]


if __name__ == "__main__":
    batch = 2
    state_dim = 8
    action_dim = 4

    key = jax.random.PRNGKey(0)
    k_x, k_p = jax.random.split(key)

    x = jax.random.normal(k_x, (batch, state_dim), dtype=jnp.float32)
    params = init_qnet_params(k_p, state_dim, action_dim)
    ref = qnet_reference(x, params)

    # f32-weight path: same MXU lowering as the JAX reference -> tight tolerance.
    fwd_f32 = make_qnet_forward(params, weight_dtype=jnp.float32)
    out = jax.block_until_ready(fwd_f32(x))
    assert out.shape == (batch, action_dim)
    assert jnp.allclose(out, ref, atol=1e-5, rtol=1e-5), "f32 mismatch vs JAX ref"

    # bf16-weight default (MXU fast path on v5e/v6e/v7x): looser tolerance.
    fwd_bf16 = make_qnet_forward(params)
    out_bf16 = jax.block_until_ready(fwd_bf16(x))
    assert out_bf16.shape == (batch, action_dim)
    assert jnp.allclose(out_bf16, ref, atol=3e-2, rtol=3e-2), "bf16 mismatch"

    # Multi-tile batch: grid >= 2 steps (engages both TCs on v7x) and a partial
    # final tile exercising the masked narrow-output writeback.
    big_batch = 1030
    big_x = jax.random.normal(k_x, (big_batch, state_dim), dtype=jnp.float32)
    big_out = jax.block_until_ready(fwd_f32(big_x))
    big_ref = qnet_reference(big_x, params)
    assert big_out.shape == (big_batch, action_dim)
    assert jnp.allclose(big_out, big_ref, atol=1e-5, rtol=1e-5), "tiled mismatch"

    print("KERNEL_OK")
</pallas_src>

<mosaic_0001>
module attributes {stable_mosaic.version = 11 : i64} {
  func.func @qnet_kernel(%arg0: i32, %arg1: memref<8x8xf32, #tpu.memory_space<vmem>>, %arg2: memref<4x128x128xf32, #tpu.memory_space<vmem>>, %arg3: memref<8x128xf32, #tpu.memory_space<vmem>>, %arg4: memref<8x4xf32, #tpu.memory_space<vmem>>) attributes {dimension_semantics = [#tpu.dimension_semantics<parallel>], iteration_bounds = array<i64: 1>, scalar_prefetch = 0 : i64, scratch_operands = 0 : i64, tpu.core_type = #tpu.core_type<tc>, window_params = [{transform_indices = @transform_0, window_bounds = array<i64: 8, 8>}, {pipeline_mode = #tpu.pipeline_mode<synchronous>, transform_indices = @transform_1, window_bounds = array<i64: 4, 128, 128>}, {pipeline_mode = #tpu.pipeline_mode<synchronous>, transform_indices = @transform_2, window_bounds = array<i64: 8, 128>}, {transform_indices = @transform_3, window_bounds = array<i64: 8, 4>}]} {
    %c0 = arith.constant 0 : index
    %c0_0 = arith.constant 0 : index
    %0 = vector.load %arg1[%c0, %c0_0] : memref<8x8xf32, #tpu.memory_space<vmem>>, vector<8x8xf32>
    %c0_1 = arith.constant 0 : index
    %c0_2 = arith.constant 0 : index
    %1 = vector.load %arg3[%c0_1, %c0_2] : memref<8x128xf32, #tpu.memory_space<vmem>>, vector<8x128xf32>
    %c0_3 = arith.constant 0 : index
    %c0_4 = arith.constant 0 : index
    %c0_5 = arith.constant 0 : index
    %2 = vector.load %arg2[%c0_3, %c0_4, %c0_5] : memref<4x128x128xf32, #tpu.memory_space<vmem>>, vector<1x8x128xf32>
    %3 = vector.shape_cast %2 : vector<1x8x128xf32> to vector<8x128xf32>
    %cst = arith.constant dense<0.000000e+00> : vector<8x128xf32>
    %4 = tpu.matmul %0, %3, %cst {dimension_numbers = #tpu.dot_dimension_numbers<[1], [0], [0], [1], [0, 0, 1, 1], [], []>} : vector<8x8xf32>, vector<8x128xf32>, vector<8x128xf32> -> vector<8x128xf32>
    %5 = vector.extract_strided_slice %1 {offsets = [0, 0], sizes = [1, 128], strides = [1, 1]} : vector<8x128xf32> to vector<1x128xf32>
    %6 = vector.broadcast %5 : vector<1x128xf32> to vector<8x128xf32>
    %7 = arith.addf %4, %6 : vector<8x128xf32>
    %cst_6 = arith.constant 0.000000e+00 : f32
    %8 = vector.broadcast %cst_6 : f32 to vector<8x128xf32>
    %9 = arith.maximumf %7, %8 : vector<8x128xf32>
    %c1 = arith.constant 1 : index
    %c0_7 = arith.constant 0 : index
    %c0_8 = arith.constant 0 : index
    %10 = vector.load %arg2[%c1, %c0_7, %c0_8] : memref<4x128x128xf32, #tpu.memory_space<vmem>>, vector<1x128x128xf32>
    %11 = vector.shape_cast %10 : vector<1x128x128xf32> to vector<128x128xf32>
    %cst_9 = arith.constant dense<0.000000e+00> : vector<8x128xf32>
    %12 = tpu.matmul %9, %11, %cst_9 {dimension_numbers = #tpu.dot_dimension_numbers<[1], [0], [0], [1], [0, 0, 1, 1], [], []>} : vector<8x128xf32>, vector<128x128xf32>, vector<8x128xf32> -> vector<8x128xf32>
    %13 = vector.extract_strided_slice %1 {offsets = [1, 0], sizes = [1, 128], strides = [1, 1]} : vector<8x128xf32> to vector<1x128xf32>
    %14 = vector.broadcast %13 : vector<1x128xf32> to vector<8x128xf32>
    %15 = arith.addf %12, %14 : vector<8x128xf32>
    %cst_10 = arith.constant 0.000000e+00 : f32
    %16 = vector.broadcast %cst_10 : f32 to vector<8x128xf32>
    %17 = arith.maximumf %15, %16 : vector<8x128xf32>
    %c2 = arith.constant 2 : index
    %c0_11 = arith.constant 0 : index
    %c0_12 = arith.constant 0 : index
    %18 = vector.load %arg2[%c2, %c0_11, %c0_12] : memref<4x128x128xf32, #tpu.memory_space<vmem>>, vector<1x128x128xf32>
    %19 = vector.shape_cast %18 : vector<1x128x128xf32> to vector<128x128xf32>
    %cst_13 = arith.constant dense<0.000000e+00> : vector<8x128xf32>
    %20 = tpu.matmul %17, %19, %cst_13 {dimension_numbers = #tpu.dot_dimension_numbers<[1], [0], [0], [1], [0, 0, 1, 1], [], []>} : vector<8x128xf32>, vector<128x128xf32>, vector<8x128xf32> -> vector<8x128xf32>
    %21 = vector.extract_strided_slice %1 {offsets = [2, 0], sizes = [1, 128], strides = [1, 1]} : vector<8x128xf32> to vector<1x128xf32>
    %22 = vector.broadcast %21 : vector<1x128xf32> to vector<8x128xf32>
    %23 = arith.addf %20, %22 : vector<8x128xf32>
    %cst_14 = arith.constant 0.000000e+00 : f32
    %24 = vector.broadcast %cst_14 : f32 to vector<8x128xf32>
    %25 = arith.maximumf %23, %24 : vector<8x128xf32>
    %c3 = arith.constant 3 : index
    %c0_15 = arith.constant 0 : index
    %c0_16 = arith.constant 0 : index
    %26 = vector.load %arg2[%c3, %c0_15, %c0_16] : memref<4x128x128xf32, #tpu.memory_space<vmem>>, vector<1x128x128xf32>
    %27 = vector.shape_cast %26 : vector<1x128x128xf32> to vector<128x128xf32>
    %cst_17 = arith.constant dense<0.000000e+00> : vector<8x128xf32>
    %28 = tpu.matmul %25, %27, %cst_17 {dimension_numbers = #tpu.dot_dimension_numbers<[1], [0], [0], [1], [0, 0, 1, 1], [], []>} : vector<8x128xf32>, vector<128x128xf32>, vector<8x128xf32> -> vector<8x128xf32>
    %29 = vector.extract_strided_slice %1 {offsets = [3, 0], sizes = [1, 128], strides = [1, 1]} : vector<8x128xf32> to vector<1x128xf32>
    %30 = vector.broadcast %29 : vector<1x128xf32> to vector<8x128xf32>
    %31 = arith.addf %28, %30 : vector<8x128xf32>
    %32 = vector.extract_strided_slice %31 {offsets = [0, 0], sizes = [8, 4], strides = [1, 1]} : vector<8x128xf32> to vector<8x4xf32>
    %c0_18 = arith.constant 0 : index
    %c0_19 = arith.constant 0 : index
    %33 = vector.load %arg4[%c0_18, %c0_19] : memref<8x4xf32, #tpu.memory_space<vmem>>, vector<8x4xf32>
    tpu.vector_store %arg4[%c0_18, %c0_19], %32 {strides = array<i32>} : memref<8x4xf32, #tpu.memory_space<vmem>>, vector<8x4xf32>,
    return
  }
  func.func @transform_0(%arg0: i32) -> (i32, i32) {
    %c0_i32 = arith.constant 0 : i32
    %c0_i32_0 = arith.constant 0 : i32
    return %arg0, %c0_i32 : i32, i32
  }
  func.func @transform_1(%arg0: i32) -> (i32, i32, i32) {
    %c0_i32 = arith.constant 0 : i32
    %c0_i32_0 = arith.constant 0 : i32
    %c0_i32_1 = arith.constant 0 : i32
    %c0_i32_2 = arith.constant 0 : i32
    return %c0_i32, %c0_i32_0, %c0_i32_1 : i32, i32, i32
  }
  func.func @transform_2(%arg0: i32) -> (i32, i32) {
    %c0_i32 = arith.constant 0 : i32
    %c0_i32_0 = arith.constant 0 : i32
    %c0_i32_1 = arith.constant 0 : i32
    return %c0_i32, %c0_i32_0 : i32, i32
  }
  func.func @transform_3(%arg0: i32) -> (i32, i32) {
    %c0_i32 = arith.constant 0 : i32
    %c0_i32_0 = arith.constant 0 : i32
    return %arg0, %c0_i32 : i32, i32
  }
}

</mosaic_0001>

<bundles_post_ra>
// kernel: forward.1
= control target key start
LH: loop header
LB: loop body
LE: loop exit
PB: predicated region body
PF: predicated region fallthrough
CT: control target
= control target key end

     0   :  { %8 = vsyncpa [#allocation3], 0  ;;  %s808_s0 = inlined_call_operand.hbm [shape: f32[2,8], index: 0, kind: input, shape index: {}]   ;;  %s809_s1 = inlined_call_operand.hbm [shape: f32[4,128,128], index: 1, kind: input, shape index: {}]   ;;  %s810_s2 = inlined_call_operand.hbm [shape: f32[8,128], index: 2, kind: input, shape index: {}]   ;;  %s811_s3 = inlined_call_operand.hbm [shape: f32[2,4], index: 3, kind: output, shape index: {}]  }
   0x1   :  { %9 = vsyncpa [#allocation6], 0 }
   0x2   :  { %10 = vsyncpa [#allocation4], 0 }
   0x3   :  { %15 = vsyncadd [#allocation3], 96  ;;  %s691_s12 = smov [#allocation5]  }
   0x4   :  { %s28_s13 = sshll.u32 %s691_s12, 4  ;;  %s29_s13 = int_to_ptr.vmem [resolvable:$true] %s28_s13 }
   0x5   :  { %s613_s14 = scalar_lea.vmem %s29_s13, 8192  ;;  %p618_p1 = scmp.lt.s32.totalorder %s29_s13, %s29_s13 }
   0x6   :  { %p614_p0 = scmp.ne.s32.totalorder %s29_s13, %s613_s14  ;;  %p619_p2 = scmp.lt.s32.totalorder %s613_s14, %s613_s14 }
   0x8   :  { %p620_p3 = por %p619_p2, %p618_p1 }
   0xa   :  { %p621_p4 = pnand %p620_p3, %p614_p0 }
   0xc   :  { %624 = shalt.err (!%p621_p4)
}
   0xd   :  { %s692_s15 = smov 128   ;;  %s693_s16 = smov 8  }
   0xe   :  { %34 = dma.hbm_to_vmem [thread:$0]  %s809_s1, 8192, %s29_s13, [#allocation6], %s692_s15, %s692_s15, %s693_s16  }
   0xf   :  { %s694_s19 = smov [#allocation2]  }
  0x10   :  { %s16_s20 = sshll.u32 %s694_s19, 4  ;;  %s17_s20 = int_to_ptr.vmem [resolvable:$true] %s16_s20 }
  0x11   :  { %s633_s21 = scalar_lea.vmem %s17_s20, 32  ;;  %s637_s22 = scalar_lea.vmem %s17_s20, 128 }
  0x12   :  { %p634_p5 = scmp.ne.s32.totalorder %s17_s20, %s633_s21  ;;  %p638_p6 = scmp.lt.s32.totalorder %s17_s20, %s17_s20 }
  0x13   :  { %p639_p7 = scmp.lt.s32.totalorder %s637_s22, %s633_s21 }
  0x15   :  { %p640_p8 = por %p639_p7, %p638_p6 }
  0x17   :  { %p641_p9 = pnand %p640_p8, %p634_p5 }
  0x19   :  { %644 = shalt.err (!%p641_p9)
}
  0x1a   :  { %s695_s23 = smov 32   ;;  %s696_s24 = smov 2  }
  0x1b   :  { %22 = dma.hbm_to_vmem [thread:$0]  %s808_s0, 32, %s17_s20, [#allocation3], %s695_s23, %s695_s23, %s696_s24  }
  0x1c   :  { %s697_s1 = smov [#allocation7]  }
  0x1d   :  { %s41_s27 = sshll.u32 %s697_s1, 4  ;;  %s42_s27 = int_to_ptr.vmem [resolvable:$true] %s41_s27 }
  0x1e   :  { %s653_s28 = scalar_lea.vmem %s42_s27, 128  ;;  %p658_p11 = scmp.lt.s32.totalorder %s42_s27, %s42_s27 }
  0x1f   :  { %p654_p10 = scmp.ne.s32.totalorder %s42_s27, %s653_s28  ;;  %p659_p12 = scmp.lt.s32.totalorder %s653_s28, %s653_s28 }
  0x21   :  { %p660_p13 = por %p659_p12, %p658_p11 }
  0x23   :  { %p661_p0 = pnand %p660_p13, %p654_p10 }
  0x25   :  { %664 = shalt.err (!%p661_p0)
}
  0x26   :  { %44 = dma.hbm_to_vmem [thread:$0]  %s810_s2, 128, %s42_s27, [#allocation6]  }
  0x27   :  { %685 = dma.done.wait [#allocation3], 128  }
  0x28   :  { %686 = vsyncadd [#allocation3], 4294967168 }
  0x29   :  { %687 = dma.done.wait [#allocation6], 8320  }
  0x2a   :  { %688 = vsyncadd [#allocation6], 4294958976  ;;  %v698_v0 = vmov 0.0   ;;  %vm699_vm0 = vmmov 0   ;;  %vm61_vm1 = vcmask 64512   ;;  %v56_v1 = vld [vmem:[#allocation5] sm:$0xff]  ;;  %v57_v32 = vlaneseq }
  0x2b   :  { %485 = vmatprep.subr.mxu0 %v698_v0  ;;  %487 = vmatprep.mubr.msk.f32.mxu0 %vm699_vm0, %v698_v0  ;;  %v54_v2 = vld [vmem:[#allocation2] sm:$0xff]  ;;  %v151_v4 = vld [vmem:[#allocation5 + $0xf0] sm:$0xff]  ;;  %v150_v5 = vld [vmem:[#allocation5 + $0xe8] sm:$0xff]  ;;  %vm411_vm2 = vcmask 31744  }
  0x2c   :  { %490 = vmatprep.subr.mxu1 %v698_v0  ;;  %522 = vmatprep.mubr.msk.f32.mxu1 %vm699_vm0, %v698_v0  ;;  %v152_v3 = vld [vmem:[#allocation5 + $0xf8] sm:$0xff]  ;;  %v149_v6 = vld [vmem:[#allocation5 + $0xe0] sm:$0xff]  ;;  %v147_v8 = vld [vmem:[#allocation5 + $0xd0] sm:$0xff]  ;;  %v771_v33 = vshrl.u32 %v57_v32, 7 }
  0x2d   :  { %486 = vmatpush3.msra.mxu0 %v56_v1  ;;  %491 = vmatpush3.msra.mxu1 %v152_v3  ;;  %v148_v7 = vld [vmem:[#allocation5 + $0xd8] sm:$0xff]  ;;  %v146_v9 = vld [vmem:[#allocation5 + $0xc8] sm:$0xff]  ;;  %v145_v10 = vld [vmem:[#allocation5 + $0xc0] sm:$0xff] }
  0x2e   :  { %488 = vmatmul.mubr.msk.f32.vlgmr.msra.gmra.mxu0 %vm61_vm1, %v54_v2  ;;  %492 = vmatprep.subr.mxu1 %v698_v0  ;;  %v144_v11 = vld [vmem:[#allocation5 + $0xb8] sm:$0xff]  ;;  %v143_v12 = vld [vmem:[#allocation5 + $0xb0] sm:$0xff]  ;;  %v142_v13 = vld [vmem:[#allocation5 + $0xa8] sm:$0xff]  ;;  %v59_v34 = vsub.s32 0, %v771_v33  ;;  %v155_v57 = vsub.s32 1, %v771_v33  ;;  %v247_v3 = vsub.s32 2, %v771_v33 }
  0x2f   :  { %493 = vmatpush3.msra.mxu1 %v151_v4  ;;  %525 = vmatprep.subr.mxu0 %v698_v0  ;;  %v141_v14 = vld [vmem:[#allocation5 + $0xa0] sm:$0xff]  ;;  %v140_v15 = vld [vmem:[#allocation5 + $0x98] sm:$0xff]  ;;  %v139_v16 = vld [vmem:[#allocation5 + $0x90] sm:$0xff] }
  0x30   :  { %494 = vmatprep.subr.mxu1 %v698_v0  ;;  %557 = vmatprep.mubr.msk.f32.mxu0 %vm699_vm0, %v698_v0  ;;  %v138_v17 = vld [vmem:[#allocation5 + $0x88] sm:$0xff]  ;;  %v137_v18 = vld [vmem:[#allocation5 + $0x80] sm:$0xff]  ;;  %v244_v19 = vld [vmem:[#allocation5 + $0x178] sm:$0xff] }
  0x31   :  { %495 = vmatpush3.msra.mxu1 %v150_v5  ;;  %v243_v20 = vld [vmem:[#allocation5 + $0x170] sm:$0xff]  ;;  %526 = vmatpush3.msra.mxu0 %v244_v19  ;;  %v242_v21 = vld [vmem:[#allocation5 + $0x168] sm:$0xff]  ;;  %v241_v22 = vld [vmem:[#allocation5 + $0x160] sm:$0xff] }
  0x32   :  { %496 = vmatprep.subr.mxu1 %v698_v0  ;;  %527 = vmatprep.subr.mxu0 %v698_v0  ;;  %v240_v23 = vld [vmem:[#allocation5 + $0x158] sm:$0xff]  ;;  %v239_v24 = vld [vmem:[#allocation5 + $0x150] sm:$0xff]  ;;  %v238_v25 = vld [vmem:[#allocation5 + $0x148] sm:$0xff] }
  0x33   :  { %497 = vmatpush3.msra.mxu1 %v149_v6  ;;  %528 = vmatpush3.msra.mxu0 %v243_v20  ;;  %v237_v26 = vld [vmem:[#allocation5 + $0x140] sm:$0xff]  ;;  %v236_v27 = vld [vmem:[#allocation5 + $0x138] sm:$0xff]  ;;  %v235_v28 = vld [vmem:[#allocation5 + $0x130] sm:$0xff] }
  0x34   :  { %498 = vmatprep.subr.mxu1 %v698_v0  ;;  %529 = vmatprep.subr.mxu0 %v698_v0  ;;  %v234_v29 = vld [vmem:[#allocation5 + $0x128] sm:$0xff]  ;;  %v233_v30 = vld [vmem:[#allocation5 + $0x120] sm:$0xff]  ;;  %v232_v31 = vld [vmem:[#allocation5 + $0x118] sm:$0xff] }
  0x35   :  { %499 = vmatpush3.msra.mxu1 %v148_v7  ;;  %530 = vmatpush3.msra.mxu0 %v242_v21  ;;  %v774_v35 = vld [vmem:[#allocation7] sm:$0xff]  ;;  %v231_v41 = vld [vmem:[#allocation5 + $0x110] sm:$0xff]  ;;  %v230_v42 = vld [vmem:[#allocation5 + $0x108] sm:$0xff] }
  0x36   :  { %500 = vmatprep.subr.mxu1 %v698_v0  ;;  %531 = vmatprep.subr.mxu0 %v698_v0  ;;  %v60_v36 = vrot.slane %v774_v35, %v59_v34  ;;  %v229_v43 = vld [vmem:[#allocation5 + $0x100] sm:$0xff]  ;;  %v336_v44 = vld [vmem:[#allocation5 + $0x1f8] sm:$0xff]  ;;  %v335_v45 = vld [vmem:[#allocation5 + $0x1f0] sm:$0xff]  ;;  %v156_v58 = vrot.slane %v774_v35, %v155_v57  ;;  %v248_v4 = vrot.slane %v774_v35, %v247_v3 }
  0x37   :  { %501 = vmatpush3.msra.mxu1 %v147_v8  ;;  %532 = vmatpush3.msra.mxu0 %v241_v22  ;;  %v334_v46 = vld [vmem:[#allocation5 + $0x1e8] sm:$0xff]  ;;  %v333_v47 = vld [vmem:[#allocation5 + $0x1e0] sm:$0xff]  ;;  %v332_v48 = vld [vmem:[#allocation5 + $0x1d8] sm:$0xff] }
  0x38   :  { %502 = vmatprep.subr.mxu1 %v698_v0  ;;  %533 = vmatprep.subr.mxu0 %v698_v0  ;;  %v331_v49 = vld [vmem:[#allocation5 + $0x1d0] sm:$0xff]  ;;  %v330_v50 = vld [vmem:[#allocation5 + $0x1c8] sm:$0xff]  ;;  %v329_v51 = vld [vmem:[#allocation5 + $0x1c0] sm:$0xff] }
  0x39   :  { %503 = vmatpush3.msra.mxu1 %v146_v9  ;;  %534 = vmatpush3.msra.mxu0 %v240_v23  ;;  %v328_v52 = vld [vmem:[#allocation5 + $0x1b8] sm:$0xff]  ;;  %v327_v53 = vld [vmem:[#allocation5 + $0x1b0] sm:$0xff]  ;;  %v326_v54 = vld [vmem:[#allocation5 + $0x1a8] sm:$0xff]  ;;  %v339_v9 = vsub.s32 3, %v771_v33 }
  0x3a   :  { %504 = vmatprep.subr.mxu1 %v698_v0  ;;  %535 = vmatprep.subr.mxu0 %v698_v0  ;;  %v325_v55 = vld [vmem:[#allocation5 + $0x1a0] sm:$0xff]  ;;  %v324_v56 = vld [vmem:[#allocation5 + $0x198] sm:$0xff]  ;;  %v323_v63 = vld [vmem:[#allocation5 + $0x190] sm:$0xff] }
  0x3b   :  { %505 = vmatpush3.msra.mxu1 %v145_v10  ;;  %536 = vmatpush3.msra.mxu0 %v239_v24  ;;  %v322_v1 = vld [vmem:[#allocation5 + $0x188] sm:$0xff]  ;;  %v321_v2 = vld [vmem:[#allocation5 + $0x180] sm:$0xff]  ;;  %v340_v10 = vrot.slane %v774_v35, %v339_v9 }
  0x3c   :  { %506 = vmatprep.subr.mxu1 %v698_v0  ;;  %537 = vmatprep.subr.mxu0 %v698_v0 }
  0x3d   :  { %507 = vmatpush3.msra.mxu1 %v144_v11  ;;  %538 = vmatpush3.msra.mxu0 %v238_v25 }
  0x3e   :  { %508 = vmatprep.subr.mxu1 %v698_v0  ;;  %539 = vmatprep.subr.mxu0 %v698_v0 }
  0x3f   :  { %509 = vmatpush3.msra.mxu1 %v143_v12  ;;  %540 = vmatpush3.msra.mxu0 %v237_v26 }
  0x40   :  { %510 = vmatprep.subr.mxu1 %v698_v0  ;;  %541 = vmatprep.subr.mxu0 %v698_v0 }
  0x41   :  { %511 = vmatpush3.msra.mxu1 %v142_v13  ;;  %542 = vmatpush3.msra.mxu0 %v236_v27 }
  0x42   :  { %512 = vmatprep.subr.mxu1 %v698_v0  ;;  %543 = vmatprep.subr.mxu0 %v698_v0 }
  0x43   :  { %513 = vmatpush3.msra.mxu1 %v141_v14  ;;  %544 = vmatpush3.msra.mxu0 %v235_v28 }
  0x44   :  { %514 = vmatprep.subr.mxu1 %v698_v0  ;;  %545 = vmatprep.subr.mxu0 %v698_v0 }
  0x45   :  { %515 = vmatpush3.msra.mxu1 %v140_v15  ;;  %546 = vmatpush3.msra.mxu0 %v234_v29 }
  0x46   :  { %516 = vmatprep.subr.mxu1 %v698_v0  ;;  %547 = vmatprep.subr.mxu0 %v698_v0 }
  0x47   :  { %517 = vmatpush3.msra.mxu1 %v139_v16  ;;  %548 = vmatpush3.msra.mxu0 %v233_v30 }
  0x48   :  { %518 = vmatprep.subr.mxu1 %v698_v0  ;;  %549 = vmatprep.subr.mxu0 %v698_v0 }
  0x49   :  { %519 = vmatpush3.msra.mxu1 %v138_v17  ;;  %550 = vmatpush3.msra.mxu0 %v232_v31 }
  0x4a   :  { %520 = vmatprep.subr.mxu1 %v698_v0  ;;  %551 = vmatprep.subr.mxu0 %v698_v0 }
  0x4b   :  { %521 = vmatpush3.msra.mxu1 %v137_v18  ;;  %552 = vmatpush3.msra.mxu0 %v231_v41 }
  0x4c   :  { %560 = vmatprep.subr.mxu1 %v698_v0  ;;  %553 = vmatprep.subr.mxu0 %v698_v0 }
  0x4d   :  { %554 = vmatpush3.msra.mxu0 %v230_v42 }
  0x4e   :  { %555 = vmatprep.subr.mxu0 %v698_v0 }
  0x4f   :  { %556 = vmatpush3.msra.mxu0 %v229_v43 }
  0xee   :  { %v131_v37 = vpop.f32.mrf.mxu0 }
  0xef   :  { %v132_v38 = vadd.f32 %v131_v37, %v60_v36 }
  0xf0   :  { %v489_v39 = vpop.f32.mrf.mxu0 }
  0xf1   :  { %v135_v40 = vmax.f32 %v132_v38, 0.0 }
  0xf3   :  { %523 = vmatmul.mubr.f32.vlgmr.msra.gmra.mxu1 %v135_v40 }
  0xf4   :  { %592 = vmatprep.mubr.msk.f32.mxu1 %vm699_vm0, %v698_v0  ;;  %561 = vmatpush3.msra.mxu1 %v336_v44 }
  0xf5   :  { %562 = vmatprep.subr.mxu1 %v698_v0 }
  0xf6   :  { %563 = vmatpush3.msra.mxu1 %v335_v45 }
  0xf7   :  { %564 = vmatprep.subr.mxu1 %v698_v0 }
  0xf8   :  { %565 = vmatpush3.msra.mxu1 %v334_v46 }
  0xf9   :  { %566 = vmatprep.subr.mxu1 %v698_v0 }
  0xfa   :  { %567 = vmatpush3.msra.mxu1 %v333_v47 }
  0xfb   :  { %568 = vmatprep.subr.mxu1 %v698_v0 }
  0xfc   :  { %569 = vmatpush3.msra.mxu1 %v332_v48 }
  0xfd   :  { %570 = vmatprep.subr.mxu1 %v698_v0 }
  0xfe   :  { %571 = vmatpush3.msra.mxu1 %v331_v49 }
  0xff   :  { %572 = vmatprep.subr.mxu1 %v698_v0 }
 0x100   :  { %573 = vmatpush3.msra.mxu1 %v330_v50 }
 0x101   :  { %574 = vmatprep.subr.mxu1 %v698_v0 }
 0x102   :  { %575 = vmatpush3.msra.mxu1 %v329_v51 }
 0x103   :  { %576 = vmatprep.subr.mxu1 %v698_v0 }
 0x104   :  { %577 = vmatpush3.msra.mxu1 %v328_v52 }
 0x105   :  { %578 = vmatprep.subr.mxu1 %v698_v0 }
 0x106   :  { %579 = vmatpush3.msra.mxu1 %v327_v53 }
 0x107   :  { %580 = vmatprep.subr.mxu1 %v698_v0 }
 0x108   :  { %581 = vmatpush3.msra.mxu1 %v326_v54 }
 0x109   :  { %582 = vmatprep.subr.mxu1 %v698_v0 }
 0x10a   :  { %583 = vmatpush3.msra.mxu1 %v325_v55 }
 0x10b   :  { %584 = vmatprep.subr.mxu1 %v698_v0 }
 0x10c   :  { %585 = vmatpush3.msra.mxu1 %v324_v56 }
 0x10d   :  { %586 = vmatprep.subr.mxu1 %v698_v0 }
 0x10e   :  { %587 = vmatpush3.msra.mxu1 %v323_v63 }
 0x10f   :  { %588 = vmatprep.subr.mxu1 %v698_v0 }
 0x110   :  { %589 = vmatpush3.msra.mxu1 %v322_v1 }
 0x111   :  { %590 = vmatprep.subr.mxu1 %v698_v0 }
 0x112   :  { %591 = vmatpush3.msra.mxu1 %v321_v2 }
 0x1b3   :  { %v223_v59 = vpop.f32.mrf.mxu1 }
 0x1b4   :  { %v224_v60 = vadd.f32 %v223_v59, %v156_v58 }
 0x1b5   :  { %v524_v61 = vpop.f32.mrf.mxu1 }
 0x1b6   :  { %v227_v62 = vmax.f32 %v224_v60, 0.0 }
 0x1b8   :  { %558 = vmatmul.mubr.f32.vlgmr.msra.gmra.mxu0 %v227_v62 }
 0x278   :  { %v315_v5 = vpop.f32.mrf.mxu0 }
 0x279   :  { %v316_v6 = vadd.f32 %v315_v5, %v248_v4 }
 0x27a   :  { %v559_v7 = vpop.f32.mrf.mxu0 }
 0x27b   :  { %v319_v8 = vmax.f32 %v316_v6, 0.0 }
 0x27d   :  { %593 = vmatmul.mubr.f32.vlgmr.msra.gmra.mxu1 %v319_v8 }
 0x33d   :  { %v407_v11 = vpop.f32.mrf.mxu1 }
 0x33e   :  { %v408_v12 = vadd.f32 %v407_v11, %v340_v10 }
 0x33f   :  { %v594_v13 = vpop.f32.mrf.mxu1 }
 0x340   :  { %412 = vst.msk [vmem:[#allocation8] sm:$0xff] %vm411_vm2, %v408_v12 }
 0x341   :  { %417 = vsyncadd [#allocation4], 96  ;;  %s700_s0 = smov [#allocation8]  }
 0x342   :  { %s418_s2 = sshll.u32 %s700_s0, 4  ;;  %s419_s2 = int_to_ptr.vmem [resolvable:$true] %s418_s2 }
 0x343   :  { %s665_s4 = scalar_lea.vmem %s419_s2, 32  ;;  %s669_s5 = scalar_lea.vmem %s419_s2, 128 }
 0x344   :  { %p666_p1 = scmp.ne.s32.totalorder %s419_s2, %s665_s4  ;;  %p670_p2 = scmp.lt.s32.totalorder %s419_s2, %s419_s2 }
 0x345   :  { %p671_p3 = scmp.lt.s32.totalorder %s669_s5, %s665_s4 }
 0x347   :  { %p672_p4 = por %p671_p3, %p670_p2 }
 0x349   :  { %p673_p5 = pnand %p672_p4, %p666_p1 }
 0x34b   :  { %676 = shalt.err (!%p673_p5)
}
 0x34c   :  { %424 = dma.vmem_to_hbm [thread:$0]  %s419_s2, 32, %s811_s3, [#allocation4], %s695_s23, %s695_s23, %s696_s24  }
 0x34d   :  { %689 = dma.done.wait [#allocation4], 128  }
 0x34e   :  { %690 = vsyncadd [#allocation4], 4294967168 }
 0x34f   :  { %428 = vsyncpa [#allocation3], 1 }
 0x350   :  { %429 = vsyncpa [#allocation6], 1 }
 0x351   :  { %430 = vsyncpa [#allocation4], 1 }

</bundles_post_ra>
